<compile_context>
chip_gen: v5e
topology: v5e:2x2
jax: 0.10.0
libtpu: 0.0.40
codegen_flags: <defaults>
</compile_context>

<pallas_src>
import functools

import jax
import jax.numpy as jnp
import numpy as np
from jax import lax
from jax.experimental import pallas as pl
from jax.experimental.pallas import tpu as pltpu


def make_critic_kernel(batch, a_pad, in_channels, hidden):
    """Kernel closing over the (small, static) problem dimensions."""
    C, H = in_channels, hidden
    # lstm_pack row layout (all rows 4H lanes wide), gate order (i, f, o, g)
    R_WIH_X, R_WIH_A, R_BL, R_WHH = 0, C, C + 1, 8
    # misc_pack row layout (H lanes wide)
    R_WG, R_BG, R_W1, R_B1, R_W2, R_B2 = 0, C, 8, 8 + H, 8 + H + 1, 8 + H + 2

    def kernel(a_hat_ref, xa_ref, seg_ref, lstm_ref, misc_ref, out_ref):
        f32 = jnp.float32

        # -- unpack the two weight slabs (static slices, loaded once) --
        wih_x = lstm_ref[R_WIH_X:R_WIH_X + C, :]           # [C, 4H]
        wih_a = lstm_ref[R_WIH_A:R_WIH_A + 1, :]           # [1, 4H]
        bl = lstm_ref[R_BL:R_BL + 1, :]                    # [1, 4H]  (b_ih + b_hh)
        whh = lstm_ref[R_WHH:R_WHH + H, :]                 # [H, 4H]
        wg = misc_ref[R_WG:R_WG + C, :C]                   # [C, C]
        bg = misc_ref[R_BG:R_BG + 1, :C]                   # [1, C]
        w1 = misc_ref[R_W1:R_W1 + H, :]                    # [H, H]
        b1 = misc_ref[R_B1:R_B1 + 1, :]                    # [1, H]
        w2r = misc_ref[R_W2:R_W2 + 1, :]                   # [1, H]  (= w2.T)
        b2 = misc_ref[R_B2:R_B2 + 1, :][:, :1]             # [1, 1]

        xa = xa_ref[...]                                   # [Np, C+1]
        s = xa[:, :C]                                      # node features
        act = xa[:, C:C + 1]                               # action column

        # ---- GCNConv: A_hat @ (X @ W) + b, ReLU, residual add ----
        xw = jnp.dot(s, wg, preferred_element_type=f32)
        gcn = jnp.dot(a_hat_ref[...], xw, preferred_element_type=f32) + bg
        gcn = jnp.maximum(gcn, 0.0) + s                    # [Np, C]

        # ---- Hoisted, fused LSTM input terms (independent of h), all steps ----
        pre_all = (jnp.dot(gcn, wih_x, preferred_element_type=f32)
                   + act * wih_a + bl)                     # [Np, 4H], vreg-resident

        # ---- LSTM recurrence: only h @ Whh + elementwise/EUP on the serial path
        h = jnp.zeros((a_pad, H), f32)
        c = jnp.zeros((a_pad, H), f32)
        hs = []
        # B is tiny -> static unroll with 8-aligned static slices (LLO-visible).
        # TODO(synk): for large B, switch to lax.fori_loop carrying (h, c) and a
        # VMEM h-history, indexing pre with pl.ds(pl.multiple_of(t*a_pad, 8), a_pad).
        for t in range(batch):
            r0 = t * a_pad                                 # 8-aligned
            pre = pre_all[r0:r0 + a_pad, :] + jnp.dot(
                h, whh, preferred_element_type=f32)        # [Ap, 4H]
            ifo = jax.nn.sigmoid(pre[:, :3 * H])           # gates (i, f, o)
            g = jnp.tanh(pre[:, 3 * H:])
            c = ifo[:, H:2 * H] * c + ifo[:, :H] * g
            h = ifo[:, 2 * H:] * jnp.tanh(c)               # [Ap, H]
            hs.append(h)
        h_all = jnp.concatenate(hs, axis=0)                # [Np, H], stays in vregs

        # ---- Batched readout (out of the serial loop) ----
        y = jnp.maximum(jnp.dot(h_all, w1, preferred_element_type=f32) + b1, 0.0)
        # segment-sum over act_dim (also masks padded rows) as one MXU matmul
        ysum = jnp.dot(seg_ref[...], y, preferred_element_type=f32)   # [B, H]
        # lin2 as a transposed-RHS matmul -> single [1, B] store
        val = lax.dot_general(w2r, ysum, (((1,), (1,)), ((), ())),
                              preferred_element_type=f32)             # [1, B]
        out_ref[...] = val + b2

    return kernel


def pack_params(params, in_channels, hidden):
    """One-time packing of all weights into two lane-dense slabs (off hot path)."""
    c, h = in_channels, hidden
    assert c + 2 <= 8 and c <= h, "pack layout assumes C+2 <= 8 and C <= H"
    perm = (0, 1, 3, 2)                                   # (i,f,g,o) -> (i,f,o,g)
    wih, whh, bl = params["wih"], params["whh"], params["bl"]
    wih_xf = jnp.concatenate([wih[k, :c, :] for k in perm], axis=-1)       # [C, 4H]
    wih_af = jnp.concatenate([wih[k, c:c + 1, :] for k in perm], axis=-1)  # [1, 4H]
    whh_f = jnp.concatenate([whh[k] for k in perm], axis=-1)               # [H, 4H]
    bl_f = jnp.concatenate([bl[k] for k in perm], axis=-1)                 # [1, 4H]

    lstm_pack = jnp.zeros((8 + h, 4 * h), jnp.float32)
    lstm_pack = lstm_pack.at[0:c].set(wih_xf)
    lstm_pack = lstm_pack.at[c:c + 1].set(wih_af)
    lstm_pack = lstm_pack.at[c + 1:c + 2].set(bl_f)
    lstm_pack = lstm_pack.at[8:8 + h].set(whh_f)

    rows = ((8 + h + 3 + 7) // 8) * 8
    misc_pack = jnp.zeros((rows, h), jnp.float32)
    misc_pack = misc_pack.at[0:c, 0:c].set(params["wg"])
    misc_pack = misc_pack.at[c:c + 1, 0:c].set(params["bg"])
    misc_pack = misc_pack.at[8:8 + h].set(params["w1"])
    misc_pack = misc_pack.at[8 + h:8 + h + 1].set(params["b1"])
    misc_pack = misc_pack.at[8 + h + 1:8 + h + 2].set(params["w2"].T)
    misc_pack = misc_pack.at[8 + h + 2, 0].set(params["b2"][0, 0])
    return dict(lstm_pack=lstm_pack, misc_pack=misc_pack)


def gnn_critic_lstm(state, edge_index, action, packed, *, act_dim, hidden):
    n, c = state.shape
    b = action.shape[0]
    assert n == b * act_dim
    a_pad = ((act_dim + 7) // 8) * 8                      # sublane-align slabs
    n_pad = b * a_pad
    # perf-layout assumptions (kernel is correct otherwise but loses zero-cost
    # lane/sublane slicing): 4H lane-dense, C+2 rows fit one sublane tile.
    assert (4 * hidden) % 128 == 0 and c + 2 <= 8

    # ---- glue: dense GCN-normalized adjacency with self loops (no scatters) ----
    # PyG convention: edge_index[0]=source j, edge_index[1]=target i.
    src, dst = edge_index[0], edge_index[1]
    adj = (jax.nn.one_hot(dst, n, dtype=jnp.float32).T
           @ jax.nn.one_hot(src, n, dtype=jnp.float32)
           + jnp.eye(n, dtype=jnp.float32))
    deg = adj.sum(axis=1)
    dinv = jnp.where(deg > 0, lax.rsqrt(deg), 0.0)
    a_hat = dinv[:, None] * adj * dinv[None, :]

    # ---- glue: padded, sublane-aligned layouts via reshape + pad (no scatters) --
    pad_a = a_pad - act_dim
    a_hat_pad = jnp.pad(a_hat.reshape(b, act_dim, b, act_dim),
                        ((0, 0), (0, pad_a), (0, 0), (0, pad_a))
                        ).reshape(n_pad, n_pad)
    xa = jnp.concatenate([state.astype(jnp.float32).reshape(b, act_dim, c),
                          action.astype(jnp.float32)[..., None]], axis=-1)
    xa_pad = jnp.pad(xa, ((0, 0), (0, pad_a), (0, 0))).reshape(n_pad, c + 1)

    # readout segment matrix is static given (b, act_dim) -> numpy at trace time
    padi = (np.arange(b)[:, None] * a_pad + np.arange(act_dim)[None, :]).reshape(-1)
    seg_np = np.zeros((b, n_pad), np.float32)
    seg_np[np.repeat(np.arange(b), act_dim), padi] = 1.0
    seg = jnp.asarray(seg_np)

    kernel = make_critic_kernel(b, a_pad, c, hidden)
    vmem = pl.BlockSpec(memory_space=pltpu.MemorySpace.VMEM)
    args = (a_hat_pad, xa_pad, seg, packed["lstm_pack"], packed["misc_pack"])
    # TODO(synk): to batch G independent graphs per call, stack them on a leading
    # axis, add grid=(G,) with per-graph BlockSpecs and
    # dimension_semantics=("parallel",) so v7x's two TensorCores split the grid.
    # TODO(synk): for large graphs, keep A_hat in HBM (memory_space=pl.ANY) and
    # tile the GCN matmul instead of whole-array VMEM residency (v7x = 64 MiB).
    out = pl.pallas_call(
        kernel,
        out_shape=jax.ShapeDtypeStruct((1, b), jnp.float32),
        in_specs=[vmem] * len(args),
        out_specs=vmem,
    )(*args)
    return out[0]                                          # [B]


def init_params(key, in_channels, hidden):
    c, hsz = in_channels, hidden
    ks = jax.random.split(key, 10)
    s = 0.1
    wg = s * jax.random.normal(ks[0], (c, c), jnp.float32)     # GCN weight (x @ wg)
    bg = s * jax.random.normal(ks[1], (1, c), jnp.float32)
    # LSTM weights, canonical gate order (i, f, g, o); input = [x (c), action (1)]
    wih = s * jax.random.normal(ks[2], (4, c + 1, hsz), jnp.float32)
    whh = s * jax.random.normal(ks[3], (4, hsz, hsz), jnp.float32)
    b_ih = s * jax.random.normal(ks[4], (4, hsz), jnp.float32)
    b_hh = s * jax.random.normal(ks[5], (4, hsz), jnp.float32)
    bl = (b_ih + b_hh)[:, None, :]                             # [4, 1, H]
    w1 = s * jax.random.normal(ks[6], (hsz, hsz), jnp.float32)
    b1 = s * jax.random.normal(ks[7], (1, hsz), jnp.float32)
    w2 = s * jax.random.normal(ks[8], (hsz, 1), jnp.float32)
    b2 = s * jax.random.normal(ks[9], (1, 1), jnp.float32)
    return dict(wg=wg, bg=bg, wih=wih, whh=whh, bl=bl,
                w1=w1, b1=b1, w2=w2, b2=b2)


def ref_forward(state, edge_index, action, params, *, act_dim, hidden):
    """Pure-JAX reference mirroring the PyTorch forward semantics."""
    n, c = state.shape
    b = action.shape[0]
    src, dst = edge_index[0], edge_index[1]
    adj = jnp.zeros((n, n)).at[dst, src].add(1.0) + jnp.eye(n)
    deg = adj.sum(1)
    dinv = jnp.where(deg > 0, deg ** -0.5, 0.0)
    a_hat = dinv[:, None] * adj * dinv[None, :]
    gcn = jnp.maximum(a_hat @ (state @ params["wg"]) + params["bg"], 0.0) + state
    x = gcn.reshape(b, act_dim, c)
    concat = jnp.concatenate([x, action[..., None]], axis=-1)      # [B, A, C+1]
    h = jnp.zeros((act_dim, hidden))
    cst = jnp.zeros((act_dim, hidden))
    wih, whh, bl = params["wih"], params["whh"], params["bl"][:, 0, :]
    outs = []
    for t in range(b):
        xt = concat[t]
        g = [xt @ wih[k] + h @ whh[k] + bl[k] for k in range(4)]
        i = jax.nn.sigmoid(g[0]); f = jax.nn.sigmoid(g[1])
        gg = jnp.tanh(g[2]); o = jax.nn.sigmoid(g[3])
        cst = f * cst + i * gg
        h = o * jnp.tanh(cst)
        y = jnp.maximum(h @ params["w1"] + params["b1"], 0.0)
        outs.append(y.sum(0) @ params["w2"][:, 0] + params["b2"][0, 0])
    return jnp.stack(outs)


if __name__ == "__main__":
    B, ACT_DIM, C, H = 2, 6, 4, 32
    N = B * ACT_DIM

    key = jax.random.PRNGKey(0)
    k1, k2, k3 = jax.random.split(key, 3)
    state = jax.random.normal(k1, (N, C), jnp.float32)             # graph node feats
    action = jax.random.normal(k2, (B, ACT_DIM), jnp.float32)
    # simple bidirectional ring graph over the N nodes
    idx = jnp.arange(N, dtype=jnp.int32)
    src = jnp.concatenate([idx, (idx + 1) % N])
    dst = jnp.concatenate([(idx + 1) % N, idx])
    edge_index = jnp.stack([src, dst])                             # [2, 2N]

    params = init_params(k3, C, H)
    packed = pack_params(params, C, H)       # one-time weight packing, off hot path

    fwd = jax.jit(functools.partial(gnn_critic_lstm, act_dim=ACT_DIM, hidden=H))
    out = jax.block_until_ready(fwd(state, edge_index, action, packed))

    ref = ref_forward(state, edge_index, action, params,
                      act_dim=ACT_DIM, hidden=H)
    assert out.shape == (B,)
    np.testing.assert_allclose(np.asarray(out), np.asarray(ref),
                               rtol=1e-4, atol=1e-4)
    print("KERNEL_OK")
</pallas_src>

<mosaic_0001>
module attributes {stable_mosaic.version = 11 : i64} {
  func.func @kernel(%arg0: memref<16x16xf32, #tpu.memory_space<vmem>>, %arg1: memref<16x5xf32, #tpu.memory_space<vmem>>, %arg2: memref<2x16xf32, #tpu.memory_space<vmem>>, %arg3: memref<40x128xf32, #tpu.memory_space<vmem>>, %arg4: memref<48x32xf32, #tpu.memory_space<vmem>>, %arg5: memref<1x2xf32, #tpu.memory_space<vmem>>) attributes {dimension_semantics = [], scalar_prefetch = 0 : i64, scratch_operands = 0 : i64, tpu.core_type = #tpu.core_type<tc>} {
    %c0 = arith.constant 0 : index
    %c0_0 = arith.constant 0 : index
    %0 = vector.load %arg3[%c0, %c0_0] : memref<40x128xf32, #tpu.memory_space<vmem>>, vector<4x128xf32>
    %c4 = arith.constant 4 : index
    %c0_1 = arith.constant 0 : index
    %1 = vector.load %arg3[%c4, %c0_1] : memref<40x128xf32, #tpu.memory_space<vmem>>, vector<1x128xf32>
    %c5 = arith.constant 5 : index
    %c0_2 = arith.constant 0 : index
    %2 = vector.load %arg3[%c5, %c0_2] : memref<40x128xf32, #tpu.memory_space<vmem>>, vector<1x128xf32>
    %c8 = arith.constant 8 : index
    %c0_3 = arith.constant 0 : index
    %3 = vector.load %arg3[%c8, %c0_3] : memref<40x128xf32, #tpu.memory_space<vmem>>, vector<32x128xf32>
    %c0_4 = arith.constant 0 : index
    %c0_5 = arith.constant 0 : index
    %4 = vector.load %arg4[%c0_4, %c0_5] : memref<48x32xf32, #tpu.memory_space<vmem>>, vector<4x4xf32>
    %c4_6 = arith.constant 4 : index
    %c0_7 = arith.constant 0 : index
    %5 = vector.load %arg4[%c4_6, %c0_7] : memref<48x32xf32, #tpu.memory_space<vmem>>, vector<1x4xf32>
    %c8_8 = arith.constant 8 : index
    %c0_9 = arith.constant 0 : index
    %6 = vector.load %arg4[%c8_8, %c0_9] : memref<48x32xf32, #tpu.memory_space<vmem>>, vector<32x32xf32>
    %c40 = arith.constant 40 : index
    %c0_10 = arith.constant 0 : index
    %7 = vector.load %arg4[%c40, %c0_10] : memref<48x32xf32, #tpu.memory_space<vmem>>, vector<1x32xf32>
    %c41 = arith.constant 41 : index
    %c0_11 = arith.constant 0 : index
    %8 = vector.load %arg4[%c41, %c0_11] : memref<48x32xf32, #tpu.memory_space<vmem>>, vector<1x32xf32>
    %c42 = arith.constant 42 : index
    %c0_12 = arith.constant 0 : index
    %9 = vector.load %arg4[%c42, %c0_12] : memref<48x32xf32, #tpu.memory_space<vmem>>, vector<1x32xf32>
    %10 = vector.extract_strided_slice %9 {offsets = [0, 0], sizes = [1, 1], strides = [1, 1]} : vector<1x32xf32> to vector<1x1xf32>
    %c0_13 = arith.constant 0 : index
    %c0_14 = arith.constant 0 : index
    %11 = vector.load %arg1[%c0_13, %c0_14] : memref<16x5xf32, #tpu.memory_space<vmem>>, vector<16x5xf32>
    %12 = vector.extract_strided_slice %11 {offsets = [0, 0], sizes = [16, 4], strides = [1, 1]} : vector<16x5xf32> to vector<16x4xf32>
    %13 = vector.extract_strided_slice %11 {offsets = [0, 4], sizes = [16, 1], strides = [1, 1]} : vector<16x5xf32> to vector<16x1xf32>
    %cst = arith.constant dense<0.000000e+00> : vector<16x4xf32>
    %14 = tpu.matmul %12, %4, %cst {dimension_numbers = #tpu.dot_dimension_numbers<[1], [0], [0], [1], [0, 0, 1, 1], [], []>} : vector<16x4xf32>, vector<4x4xf32>, vector<16x4xf32> -> vector<16x4xf32>
    %c0_15 = arith.constant 0 : index
    %c0_16 = arith.constant 0 : index
    %15 = vector.load %arg0[%c0_15, %c0_16] : memref<16x16xf32, #tpu.memory_space<vmem>>, vector<16x16xf32>
    %cst_17 = arith.constant dense<0.000000e+00> : vector<16x4xf32>
    %16 = tpu.matmul %15, %14, %cst_17 {dimension_numbers = #tpu.dot_dimension_numbers<[1], [0], [0], [1], [0, 0, 1, 1], [], []>} : vector<16x16xf32>, vector<16x4xf32>, vector<16x4xf32> -> vector<16x4xf32>
    %17 = vector.broadcast %5 : vector<1x4xf32> to vector<16x4xf32>
    %18 = arith.addf %16, %17 : vector<16x4xf32>
    %cst_18 = arith.constant 0.000000e+00 : f32
    %19 = vector.broadcast %cst_18 : f32 to vector<16x4xf32>
    %20 = arith.maximumf %18, %19 : vector<16x4xf32>
    %21 = arith.addf %20, %12 : vector<16x4xf32>
    %cst_19 = arith.constant dense<0.000000e+00> : vector<16x128xf32>
    %22 = tpu.matmul %21, %0, %cst_19 {dimension_numbers = #tpu.dot_dimension_numbers<[1], [0], [0], [1], [0, 0, 1, 1], [], []>} : vector<16x4xf32>, vector<4x128xf32>, vector<16x128xf32> -> vector<16x128xf32>
    %23 = vector.broadcast %13 : vector<16x1xf32> to vector<16x128xf32>
    %24 = vector.broadcast %1 : vector<1x128xf32> to vector<16x128xf32>
    %25 = arith.mulf %23, %24 : vector<16x128xf32>
    %26 = arith.addf %22, %25 : vector<16x128xf32>
    %27 = vector.broadcast %2 : vector<1x128xf32> to vector<16x128xf32>
    %28 = arith.addf %26, %27 : vector<16x128xf32>
    %cst_20 = arith.constant 0.000000e+00 : f32
    %29 = vector.broadcast %cst_20 : f32 to vector<8x32xf32>
    %cst_21 = arith.constant 0.000000e+00 : f32
    %30 = vector.broadcast %cst_21 : f32 to vector<8x32xf32>
    %31 = vector.extract_strided_slice %28 {offsets = [0, 0], sizes = [8, 128], strides = [1, 1]} : vector<16x128xf32> to vector<8x128xf32>
    %cst_22 = arith.constant dense<0.000000e+00> : vector<8x128xf32>
    %32 = tpu.matmul %29, %3, %cst_22 {dimension_numbers = #tpu.dot_dimension_numbers<[1], [0], [0], [1], [0, 0, 1, 1], [], []>} : vector<8x32xf32>, vector<32x128xf32>, vector<8x128xf32> -> vector<8x128xf32>
    %33 = arith.addf %31, %32 : vector<8x128xf32>
    %34 = vector.extract_strided_slice %33 {offsets = [0, 0], sizes = [8, 96], strides = [1, 1]} : vector<8x128xf32> to vector<8x96xf32>
    %35 = arith.negf %34 : vector<8x96xf32>
    %36 = math.exp %35 : vector<8x96xf32>
    %cst_23 = arith.constant 1.000000e+00 : f32
    %37 = vector.broadcast %cst_23 : f32 to vector<8x96xf32>
    %38 = arith.addf %37, %36 : vector<8x96xf32>
    %39 = arith.divf %37, %38 : vector<8x96xf32>
    %40 = vector.extract_strided_slice %33 {offsets = [0, 96], sizes = [8, 32], strides = [1, 1]} : vector<8x128xf32> to vector<8x32xf32>
    %41 = math.tanh %40 : vector<8x32xf32>
    %42 = vector.extract_strided_slice %39 {offsets = [0, 32], sizes = [8, 32], strides = [1, 1]} : vector<8x96xf32> to vector<8x32xf32>
    %43 = arith.mulf %42, %30 : vector<8x32xf32>
    %44 = vector.extract_strided_slice %39 {offsets = [0, 0], sizes = [8, 32], strides = [1, 1]} : vector<8x96xf32> to vector<8x32xf32>
    %45 = arith.mulf %44, %41 : vector<8x32xf32>
    %46 = arith.addf %43, %45 : vector<8x32xf32>
    %47 = vector.extract_strided_slice %39 {offsets = [0, 64], sizes = [8, 32], strides = [1, 1]} : vector<8x96xf32> to vector<8x32xf32>
    %48 = math.tanh %46 : vector<8x32xf32>
    %49 = arith.mulf %47, %48 : vector<8x32xf32>
    %50 = vector.extract_strided_slice %28 {offsets = [8, 0], sizes = [8, 128], strides = [1, 1]} : vector<16x128xf32> to vector<8x128xf32>
    %cst_24 = arith.constant dense<0.000000e+00> : vector<8x128xf32>
    %51 = tpu.matmul %49, %3, %cst_24 {dimension_numbers = #tpu.dot_dimension_numbers<[1], [0], [0], [1], [0, 0, 1, 1], [], []>} : vector<8x32xf32>, vector<32x128xf32>, vector<8x128xf32> -> vector<8x128xf32>
    %52 = arith.addf %50, %51 : vector<8x128xf32>
    %53 = vector.extract_strided_slice %52 {offsets = [0, 0], sizes = [8, 96], strides = [1, 1]} : vector<8x128xf32> to vector<8x96xf32>
    %54 = arith.negf %53 : vector<8x96xf32>
    %55 = math.exp %54 : vector<8x96xf32>
    %cst_25 = arith.constant 1.000000e+00 : f32
    %56 = vector.broadcast %cst_25 : f32 to vector<8x96xf32>
    %57 = arith.addf %56, %55 : vector<8x96xf32>
    %58 = arith.divf %56, %57 : vector<8x96xf32>
    %59 = vector.extract_strided_slice %52 {offsets = [0, 96], sizes = [8, 32], strides = [1, 1]} : vector<8x128xf32> to vector<8x32xf32>
    %60 = math.tanh %59 : vector<8x32xf32>
    %61 = vector.extract_strided_slice %58 {offsets = [0, 32], sizes = [8, 32], strides = [1, 1]} : vector<8x96xf32> to vector<8x32xf32>
    %62 = arith.mulf %61, %46 : vector<8x32xf32>
    %63 = vector.extract_strided_slice %58 {offsets = [0, 0], sizes = [8, 32], strides = [1, 1]} : vector<8x96xf32> to vector<8x32xf32>
    %64 = arith.mulf %63, %60 : vector<8x32xf32>
    %65 = arith.addf %62, %64 : vector<8x32xf32>
    %66 = vector.extract_strided_slice %58 {offsets = [0, 64], sizes = [8, 32], strides = [1, 1]} : vector<8x96xf32> to vector<8x32xf32>
    %67 = math.tanh %65 : vector<8x32xf32>
    %68 = arith.mulf %66, %67 : vector<8x32xf32>
    %69 = tpu.concatenate %49, %68 in 0 : vector<8x32xf32>, vector<8x32xf32> -> vector<16x32xf32>
    %cst_26 = arith.constant dense<0.000000e+00> : vector<16x32xf32>
    %70 = tpu.matmul %69, %6, %cst_26 {dimension_numbers = #tpu.dot_dimension_numbers<[1], [0], [0], [1], [0, 0, 1, 1], [], []>} : vector<16x32xf32>, vector<32x32xf32>, vector<16x32xf32> -> vector<16x32xf32>
    %71 = vector.broadcast %7 : vector<1x32xf32> to vector<16x32xf32>
    %72 = arith.addf %70, %71 : vector<16x32xf32>
    %cst_27 = arith.constant 0.000000e+00 : f32
    %73 = vector.broadcast %cst_27 : f32 to vector<16x32xf32>
    %74 = arith.maximumf %72, %73 : vector<16x32xf32>
    %c0_28 = arith.constant 0 : index
    %c0_29 = arith.constant 0 : index
    %75 = vector.load %arg2[%c0_28, %c0_29] : memref<2x16xf32, #tpu.memory_space<vmem>>, vector<2x16xf32>
    %cst_30 = arith.constant dense<0.000000e+00> : vector<2x32xf32>
    %76 = tpu.matmul %75, %74, %cst_30 {dimension_numbers = #tpu.dot_dimension_numbers<[1], [0], [0], [1], [0, 0, 1, 1], [], []>} : vector<2x16xf32>, vector<16x32xf32>, vector<2x32xf32> -> vector<2x32xf32>
    %cst_31 = arith.constant dense<0.000000e+00> : vector<1x2xf32>
    %77 = tpu.matmul %8, %76, %cst_31 {dimension_numbers = #tpu.dot_dimension_numbers<[1], [1], [0], [0], [0, 0, 1, 0], [], []>} : vector<1x32xf32>, vector<2x32xf32>, vector<1x2xf32> -> vector<1x2xf32>
    %78 = vector.broadcast %10 : vector<1x1xf32> to vector<1x2xf32>
    %79 = arith.addf %77, %78 : vector<1x2xf32>
    %c0_32 = arith.constant 0 : index
    %c0_33 = arith.constant 0 : index
    %80 = vector.load %arg5[%c0_32, %c0_33] : memref<1x2xf32, #tpu.memory_space<vmem>>, vector<1x2xf32>
    tpu.vector_store %arg5[%c0_32, %c0_33], %79 {strides = array<i32>} : memref<1x2xf32, #tpu.memory_space<vmem>>, vector<1x2xf32>,
    return
  }
}

</mosaic_0001>

<bundles_post_ra>
// kernel: gnn_critic_lstm.1
= control target key start
LH: loop header
LB: loop body
LE: loop exit
PB: predicated region body
PF: predicated region fallthrough
CT: control target
= control target key end

     0   :  { %vm46_vm0 = vcmask 1043456   ;;  %vm39_vm1 = vcmask 31744   ;;  %s596_s0 = inlined_call_operand.vmem [shape: f32[16,16], index: 0, kind: input, shape index: {}]   ;;  %s597_s1 = inlined_call_operand.vmem [shape: f32[16,5], index: 1, kind: input, shape index: {}]   ;;  %s598_s2 = inlined_call_operand.vmem [shape: f32[2,16], index: 2, kind: input, shape index: {}]   ;;  %s599_s3 = inlined_call_operand.vmem [shape: f32[40,128], index: 3, kind: input, shape index: {}]   ;;  %s600_s4 = inlined_call_operand.vmem [shape: f32[48,32], index: 4, kind: input, shape index: {}]   ;;  %s601_s5 = inlined_call_operand.hbm [shape: f32[1,2], index: 5, kind: output, shape index: {}]  }
   0x1   :  { %v28_v0 = vld [vmem:[%s600_s4] sm:$0xf]  ;;  %v500_v1 = vld [vmem:[%s597_s1 + $0x8] sm:$0xff] }
   0x2   :  { %v37_v2 = vld [vmem:[%s597_s1] sm:$0xff]  ;;  %401 = vmatpush.msk.msra.mxu3 %vm46_vm0, %v28_v0  ;;  %385 = vmatpush.msk.msra.mxu0 %vm46_vm0, %v28_v0 }
   0x3   :  { %387 = vmatmul.msk.f32.vlgmr.msra.gmra.mxu3 %vm39_vm1, %v500_v1  ;;  %386 = vmatmul.msk.f32.vlgmr.msra.gmra.mxu0 %vm39_vm1, %v37_v2 }
   0x4   :  { %10 = vsyncpa [#allocation3], 0  ;;  %v73_v5 = vld [vmem:[%s596_s0] sm:$0xff]  ;;  %vm76_vm2 = vcmask 130048   ;;  %v26_v8 = vld [vmem:[%s599_s3 + $0x18] sm:$0xff]  ;;  %v458_v11 = vmov 4  }
   0x5   :  { %v27_v6 = vld [vmem:[%s599_s3 + $0x20] sm:$0xff]  ;;  %v25_v9 = vld [vmem:[%s599_s3 + $0x10] sm:$0xff]  ;;  %v24_v10 = vld [vmem:[%s599_s3 + $0x8] sm:$0xff]  ;;  %408 = vset.pattern.permute.xlu0 %v458_v11  ;;  %409 = vset.pattern.permute.xlu2 %v458_v11  ;;  %v459_v12 = vmov 0.0   ;;  %s460_s16 = smov 32   ;;  %s461_s25 = smov 64  }
   0x6   :  { %172 = vmatpush.msrb.mxu3 %v27_v6  ;;  %v21_v7 = vld [vmem:[%s599_s3] sm:$0xf]  ;;  %111 = vperm.xlu0 %408, %v37_v2   ;;  %v412_v13 = vld [vmem:[%s600_s4 + $0x4] ss:$0 sm:$0xff]  ;;  %v543_v21 = vld [vmem:[%s599_s3 + $0x5] ss:$0 sm:$0xff] }
   0x7   :  { %390 = vmatpush.msk.msra.mxu2 %vm46_vm0, %v21_v7  ;;  %v537_v18 = vld [vmem:[%s599_s3 + $0x4] ss:$0 sm:$0xff]  ;;  %v74_v43 = vld [vmem:[%s596_s0 + $0x8] sm:$0xff]  ;;  %v32_v49 = vld [vmem:[%s600_s4 + $0x18] sm:$0xff]  ;;  %vm156_vm7 = vcmask 261120   ;;  %s376_s11 = sshll.u32 %s601_s5, 4  ;;  %s377_s11 = int_to_ptr.hbm [resolvable:$true] %s376_s11 }
   0x8   :  { %173 = vmatpush.msrb.mxu3 %v26_v8  ;;  %v33_v48 = vld [vmem:[%s600_s4 + $0x20] sm:$0xff]  ;;  %v31_v50 = vld [vmem:[%s600_s4 + $0x10] sm:$0xff]  ;;  %v30_v51 = vld [vmem:[%s600_s4 + $0x8] sm:$0xff]  ;;  %vm367_vm12 = vcmask 8192  }
   0x9   :  { %299 = vmatpush.msrb.mxu0 %v33_v48 }
   0xa   :  { %174 = vmatpush.msrb.mxu3 %v25_v9 }
   0xb   :  { %300 = vmatpush.msrb.mxu0 %v32_v49 }
   0xc   :  { %175 = vmatpush.msrb.mxu3 %v24_v10 }
   0xd   :  { %176 = vmatmul.f32.vlgmr.msrb.gmra.mxu3 %v459_v12  ;;  %301 = vmatpush.msrb.mxu0 %v31_v50 }
   0xe   :  { %235 = vmatpush.msra.mxu3 %v27_v6 }
   0xf   :  { %302 = vmatpush.msrb.mxu0 %v30_v51 }
  0x10   :  { %236 = vmatpush.msra.mxu3 %v26_v8 }
  0x12   :  { %237 = vmatpush.msra.mxu3 %v25_v9 }
  0x14   :  { %238 = vmatpush.msra.mxu3 %v24_v10 }
  0x78   :  { %v112_v19 = vpop.permute.xlu0 %111 }
  0x79   :  { %v119_v20 = vmul.f32 %v537_v18, %v112_v19 }
  0x80   :  { %v67_v4 = vpop.f32.mrf.mxu0 }
  0x86   :  { %v70_v3 = vpop.f32.mrf.mxu3 }
  0x87   :  { %97 = vmatpush.msra.mxu1 %v70_v3 }
  0x89   :  { %98 = vmatpush.msra.mxu1 %v67_v4 }
  0x8a   :  { %388 = vmatmul.msk.f32.vlgmr.msra.gmra.mxu1 %vm76_vm2, %v73_v5 }
  0x90   :  { %v177_v24 = vpop.f32.mrf.mxu3 }
  0x92   :  { %389 = vmatmul.msk.f32.gmra.mxu1 %vm76_vm2, %v74_v43 }
 0x107   :  { %v100_v14 = vpop.f32.mrf.mxu1 }
 0x108   :  { %v101_v15 = vadd.f32 %v412_v13, %v100_v14 }
 0x10a   :  { %v106_v16 = vmax.f32 %v101_v15, 0.0 }
 0x10c   :  { %v108_v17 = vadd.f32 %v106_v16, %v37_v2 }
 0x10e   :  { %391 = vmatmul.msk.f32.vlgmr.msra.gmra.mxu2 %vm39_vm1, %v108_v17 }
 0x10f   :  { %v103_v52 = vpop.f32.mrf.mxu1 }
 0x110   :  { %v104_v53 = vadd.f32 %v412_v13, %v103_v52 }
 0x112   :  { %v107_v54 = vmax.f32 %v104_v53, 0.0 }
 0x114   :  { %v109_v55 = vadd.f32 %v107_v54, %v500_v1 }
 0x116   :  { %392 = vmatmul.msk.f32.gmra.mxu2 %vm39_vm1, %v109_v55 }
 0x191   :  { %v147_v22 = vpop.f32.mrf.mxu2 }
 0x192   :  { %v148_v23 = vadd.f32 %v147_v22, %v119_v20 }
 0x194   :  { %v154_v25 = vadd.f32 %v543_v21, %v148_v23 }
 0x196   :  { %v180_v26 = vadd.f32 %v177_v24, %v154_v25 }
 0x198   :  { %416 = vtanh.f32 %v180_v26  ;;  %v393_v28 = vmul.f32 -1.442695, %v180_v26  ;;  %v415_v26 = vld [vmem:[%s600_s4 + $0x28] ss:$0 sm:$0xff] }
 0x199   :  { %v150_v61 = vpop.f32.mrf.mxu2 }
 0x19a   :  { %418 = vpow2.f32 %v393_v28 }
 0x19e   :  { %v417_v27 = vpop.eup %416 }
 0x19f   :  { %203 = vrot.lane.b32.xlu0 %v417_v27, %s460_s16 }
 0x1a0   :  { %v419_v29 = vpop.eup %418 }
 0x1a1   :  { %v184_v30 = vadd.f32 1.0, %v419_v29 }
 0x1a3   :  { %420 = vrcp.f32 %v184_v30  ;;  %v196_v36 = vand.u32 2147483648, %v184_v30  ;;  %vm190_vm4 = vweird.f32 %v184_v30  ;;  %v194_v37 = vand.u32 2147483647, %v184_v30 }
 0x1a5   :  { %v197_v39 = vor.u32 1.1754944e-38, %v196_v36  ;;  %vm195_vm6 = vcmp.eq.f32.partialorder %v194_v37, 8.507059e+37  ;;  %v35_v36 = vld [vmem:[%s600_s4 + $0x29] sm:$0x1] }
 0x1a9   :  { %v421_v31 = vpop.eup %420 }
 0x1aa   :  { %v186_v32 = vmul.f32 %v421_v31, %v184_v30  ;;  %vm191_vm3 = vweird.f32 %v421_v31 }
 0x1ab   :  { %vm192_vm5 = vmor %vm190_vm4, %vm191_vm3 }
 0x1ac   :  { %v187_v33 = vsub.f32 1.0, %v186_v32  ;;  %v312_v32 = vld [vmem:[%s598_s2] sm:$0x3]  ;;  %s463_s2 = smov [#allocation2]  }
 0x1ad   :  { %s374_s8 = sshll.u32 %s463_s2, 4  ;;  %s375_s8 = int_to_ptr.vmem [resolvable:$true] %s374_s8 }
 0x1ae   :  { %v188_v34 = vmul.f32 %v421_v31, %v187_v33  ;;  %v36_v33 = vld [vmem:[%s600_s4 + $0x2a] sm:$0x1] }
 0x1b0   :  { %v189_v35 = vadd.f32 %v421_v31, %v188_v34  ;;  %v462_v34 = vmov 0  }
 0x1b1   :  { %410 = vset.pattern.permute.xlu1 %v462_v34  ;;  %411 = vset.pattern.permute.xlu0 %v462_v34 }
 0x1b2   :  { %v193_v38 = vsel %vm192_vm5, %v421_v31, %v189_v35 }
 0x1b3   :  { %v198_v41 = vsel %vm195_vm6, %v197_v39, %v193_v38 }
 0x1b4   :  { %v201_v44 = vmul.f32 0.0, %v198_v41 }
 0x211   :  { %v204_v40 = vpop.permute.xlu0 %203 }
 0x212   :  { %v206_v42 = vmul.f32 %v204_v40, %v198_v41 }
 0x214   :  { %208 = vrot.lane.b32.xlu1 %v206_v42, %s460_s16 }
 0x286   :  { %v209_v45 = vpop.permute.xlu1 %208 }
 0x287   :  { %v211_v46 = vadd.f32 %v209_v45, %v201_v44 }
 0x289   :  { %422 = vtanh.f32 %v211_v46 }
 0x28f   :  { %v423_v47 = vpop.eup %422 }
 0x290   :  { %214 = vrot.lane.b32.xlu1 %v423_v47, %s460_s16 }
 0x302   :  { %v215_v56 = vpop.permute.xlu1 %214 }
 0x303   :  { %v217_v57 = vmul.f32 %v215_v56, %v198_v41 }
 0x305   :  { %219 = vrot.lane.b32.xlu2 %v217_v57, %s461_s25 }
 0x30d   :  { %115 = vperm.xlu2 %409, %v500_v1  }
 0x35f   :  { %v220_v58 = vpop.permute.xlu2 %219 }
 0x360   :  { %394 = vmatmul.msk.f32.vlgmr.msra.gmra.mxu3 %vm156_vm7, %v220_v58  ;;  %396 = vmatmul.msk.f32.vlgmr.msrb.gmra.mxu0 %vm156_vm7, %v220_v58 }
 0x367   :  { %v116_v59 = vpop.permute.xlu2 %115 }
 0x368   :  { %v120_v60 = vmul.f32 %v537_v18, %v116_v59 }
 0x36a   :  { %v151_v62 = vadd.f32 %v150_v61, %v120_v60 }
 0x36c   :  { %v155_v63 = vadd.f32 %v543_v21, %v151_v62 }
 0x3dd   :  { %v304_v25 = vpop.f32.mrf.mxu0 }
 0x3de   :  { %v305_v28 = vadd.f32 %v415_v26, %v304_v25 }
 0x3e0   :  { %v310_v31 = vmax.f32 %v305_v28, 0.0 }
 0x3e3   :  { %v240_v0 = vpop.f32.mrf.mxu3 }
 0x3e4   :  { %v243_v2 = vadd.f32 %v240_v0, %v155_v63 }
 0x3e6   :  { %424 = vtanh.f32 %v243_v2  ;;  %v395_v1 = vmul.f32 -1.442695, %v243_v2 }
 0x3e8   :  { %426 = vpow2.f32 %v395_v1 }
 0x3ec   :  { %v425_v3 = vpop.eup %424 }
 0x3ed   :  { %266 = vrot.lane.b32.xlu0 %v425_v3, %s460_s16 }
 0x3ee   :  { %v427_v4 = vpop.eup %426 }
 0x3ef   :  { %v247_v5 = vadd.f32 1.0, %v427_v4 }
 0x3f1   :  { %428 = vrcp.f32 %v247_v5  ;;  %v259_v11 = vand.u32 2147483648, %v247_v5  ;;  %vm253_vm9 = vweird.f32 %v247_v5  ;;  %v257_v12 = vand.u32 2147483647, %v247_v5 }
 0x3f3   :  { %v260_v14 = vor.u32 1.1754944e-38, %v259_v11  ;;  %vm258_vm11 = vcmp.eq.f32.partialorder %v257_v12, 8.507059e+37 }
 0x3f7   :  { %v429_v6 = vpop.eup %428 }
 0x3f8   :  { %v249_v7 = vmul.f32 %v429_v6, %v247_v5  ;;  %vm254_vm8 = vweird.f32 %v429_v6 }
 0x3f9   :  { %vm255_vm10 = vmor %vm253_vm9, %vm254_vm8 }
 0x3fa   :  { %v250_v8 = vsub.f32 1.0, %v249_v7 }
 0x3fc   :  { %v251_v9 = vmul.f32 %v429_v6, %v250_v8 }
 0x3fe   :  { %v252_v10 = vadd.f32 %v429_v6, %v251_v9 }
 0x400   :  { %v256_v13 = vsel %vm255_vm10, %v429_v6, %v252_v10 }
 0x401   :  { %v261_v16 = vsel %vm258_vm11, %v260_v14, %v256_v13 }
 0x402   :  { %v264_v18 = vmul.f32 %v261_v16, %v211_v46 }
 0x45f   :  { %v267_v15 = vpop.permute.xlu0 %266 }
 0x460   :  { %v269_v17 = vmul.f32 %v267_v15, %v261_v16 }
 0x462   :  { %271 = vrot.lane.b32.xlu1 %v269_v17, %s460_s16 }
 0x46a   :  { %338 = vperm.xlu1 %410, %v36_v33  }
 0x4d4   :  { %v272_v19 = vpop.permute.xlu1 %271 }
 0x4d5   :  { %v274_v20 = vadd.f32 %v272_v19, %v264_v18 }
 0x4d7   :  { %430 = vtanh.f32 %v274_v20 }
 0x4dc   :  { %v339_v37 = vpop.permute.xlu1 %338 }
 0x4dd   :  { %v431_v21 = vpop.eup %430 }
 0x4de   :  { %277 = vrot.lane.b32.xlu2 %v431_v21, %s460_s16 }
 0x538   :  { %v278_v22 = vpop.permute.xlu2 %277 }
 0x539   :  { %v280_v23 = vmul.f32 %v278_v22, %v261_v16 }
 0x53b   :  { %283 = vrot.lane.b32.xlu0 %v280_v23, %s461_s25 }
 0x5ad   :  { %v284_v24 = vpop.permute.xlu0 %283 }
 0x5ae   :  { %397 = vmatmul.msk.f32.gmra.mxu0 %vm156_vm7, %v284_v24 }
 0x62b   :  { %v307_v27 = vpop.f32.mrf.mxu0 }
 0x62c   :  { %v308_v29 = vadd.f32 %v415_v26, %v307_v27 }
 0x62e   :  { %v311_v30 = vmax.f32 %v308_v29, 0.0 }
 0x630   :  { %330 = vmatpush.msrb.mxu2 %v311_v30 }
 0x632   :  { %331 = vmatpush.msrb.mxu2 %v310_v31 }
 0x633   :  { %398 = vmatmul.msk.f32.vlgmr.msrb.gmra.mxu2 %vm76_vm2, %v312_v32 }
 0x6b6   :  { %v333_v35 = vpop.f32.mrf.mxu2 }
 0x6b7   :  { %399 = vmatpush.xpose.msk.msrb.mxu1 %vm156_vm7, %v333_v35 }
 0x6ba   :  { %400 = vmatmul.msk.f32.vlgmr.msrb.gmra.mxu1 %vm156_vm7, %v35_v36 }
 0x737   :  { %v364_v38 = vpop.f32.mrf.mxu1 }
 0x738   :  { %v365_v39 = vadd.f32 %v364_v38, %v339_v37 }
 0x73a   :  { %368 = vst.msk [vmem:[#allocation2] sm:$0x1] %vm367_vm12, %v365_v39 }
 0x73b   :  { %379 = dma.vmem_to_hbm [thread:$0]  %s375_s8, 16, %s377_s11, [#allocation3]  }
 0x73c   :  { %456 = dma.done.wait [#allocation3], 16  }
 0x73d   :  { %457 = vsyncadd [#allocation3], 4294967280 }
 0x73e   :  { %384 = vsyncpa [#allocation3], 1 }

</bundles_post_ra>
